<compile_context>
chip_gen: v7x
topology: tpu7x:2x2x1
jax: 0.10.0
libtpu: 0.0.40
codegen_flags: <defaults>
</compile_context>

<pallas_src>
import functools
import math

import jax
import jax.numpy as jnp
from jax.experimental import pallas as pl
from jax.experimental.pallas import tpu as pltpu


def pointer_net_kernel(ctx_ref, dec_ref,
                       w_in_ref, b_in_ref,
                       w_h_ref, b_h_ref,
                       w2_ref,
                       out_ref,
                       ctx_t_ref,
                       *, s_valid, t_chunk):
    """One grid step: a (block_b, block_t) tile of the (B, T) problem.

    ctx_ref   : (bB, S_pad, E)   encoder context (zero-padded along S to x8)
    dec_ref   : (bB, tT, D)      decoder-state tile
    w2_ref    : (1, P)           dense2 weight as a row vector
    out_ref   : (bB, tT, S_pad)  softmax over the (masked) context axis
    ctx_t_ref : (bB, S_pad, P)   VMEM scratch holding the hoisted ctx projection
    """
    bB, s_pad, E = ctx_ref.shape
    _, tT, D = dec_ref.shape
    P = w_in_ref.shape[1]

    # Hoist the ctx projection out of the T loop: compute it once per batch
    # tile (t grid index == 0) and reuse it for every T tile of this batch tile.
    @pl.when(pl.program_id(1) == 0)
    def _():
        ctx2d = ctx_ref[...].reshape(bB * s_pad, E)
        ctx_t = jnp.dot(ctx2d, w_in_ref[...],
                        preferred_element_type=jnp.float32) + b_in_ref[...]
        ctx_t_ref[...] = ctx_t.reshape(bB, s_pad, P)

    ctx_t = ctx_t_ref[...]           # (bB, S_pad, P)
    w2_row = w2_ref[...]             # (1, P)

    n_chunks = tT // t_chunk

    def chunk_body(c, carry):
        # Process t_chunk decoder rows at a time so only a
        # (bB, t_chunk, S_pad, P) tanh slab is live.
        t0 = pl.multiple_of(c * t_chunk, t_chunk)

        dec_blk = dec_ref[:, pl.ds(t0, t_chunk), :]                    # (bB, tc, D)
        dec2d = dec_blk.reshape(bB * t_chunk, D)
        dec_t = jnp.dot(dec2d, w_h_ref[...],
                        preferred_element_type=jnp.float32) + b_h_ref[...]
        dec_t = dec_t.reshape(bB, t_chunk, P)                          # (bB, tc, P)

        # tanh(ctx_trans.unsqueeze(1) + decoder_trans.unsqueeze(2))
        h = jnp.tanh(ctx_t[:, None, :, :] + dec_t[:, :, None, :])      # (bB, tc, S_pad, P)

        # dense2: VPU multiply + lane reduce.  The dense2 bias is a no-op
        # under softmax (shift invariance) and is dropped.
        scores = jnp.sum(h * w2_row, axis=-1)                          # (bB, tc, S_pad)

        # Mask padded context positions so no probability mass leaks there.
        if s_valid < s_pad:
            col = jax.lax.broadcasted_iota(jnp.int32, scores.shape, 2)
            scores = jnp.where(col < s_valid, scores, jnp.float32(-1e30))

        # Numerically stable softmax with an EXACT divide (rows sum to 1).
        m = jnp.max(scores, axis=-1, keepdims=True)
        e = jnp.exp(scores - m)
        denom = jnp.sum(e, axis=-1, keepdims=True)
        out_ref[:, pl.ds(t0, t_chunk), :] = (e / denom).astype(out_ref.dtype)
        return carry

    jax.lax.fori_loop(0, n_chunks, chunk_body, 0)


def _round_up(x, m):
    return ((x + m - 1) // m) * m


def _vmem_budget_bytes():
    """Per-generation VMEM budget (conservative for v7x / unknown backends)."""
    try:
        kind = jax.devices()[0].device_kind.lower()
    except Exception:
        kind = ""
    if "v5" in kind or "v6" in kind:
        return 96 * 1024 * 1024      # 128 MiB physical on v5e / v6e
    return 48 * 1024 * 1024          # v7x has 64 MiB physical; also the safe default


def _choose_tiles(B, T, s_pad, E, D, P, t_chunk, budget, block_b, block_t):
    """Derive (block_b, block_t) from an explicit VMEM byte budget."""
    f32 = 4
    t_full = _round_up(max(T, t_chunk), t_chunk)

    weights = (E * P + D * P + 3 * P) * f32                 # resident weight blocks
    ctx_row = 2 * s_pad * E * f32                           # ctx block, double-buffered
    ctxt_row = s_pad * P * f32                              # hoisted ctx projection scratch
    chunk_row = 2 * t_chunk * s_pad * P * f32               # live tanh slab (+ product)
    per_t_row = (2 * D + 2 * s_pad) * f32                   # dec + out blocks, double-buffered

    cap = int(budget * 0.75)                                # headroom

    if block_b is None:
        # Keep >= 2 grid steps on the parallel batch axis when B > 1 so both
        # v7x TensorCores get work; cap at 8 rows per tile.
        block_b = 1 if B <= 1 else max(1, min(8, -(-B // 2)))
    if block_t is None:
        block_t = min(t_full, 512)
    block_t = max(t_chunk, _round_up(block_t, t_chunk))

    def fits(bb, bt):
        return weights + bb * (ctx_row + ctxt_row + chunk_row + bt * per_t_row) <= cap

    while not fits(block_b, block_t) and block_t > t_chunk:
        block_t = max(t_chunk, _round_up(block_t // 2, t_chunk))
    while not fits(block_b, block_t) and block_b > 1:
        block_b -= 1
    return block_b, block_t


def pointer_net_forward(ctx, decoder_states, params, *,
                        block_b=None, block_t=None, t_chunk=8):
    """Runs PointerNet.forward (softmax attention scores) in Pallas."""
    B, S, E = ctx.shape
    B2, T, D = decoder_states.shape
    assert B == B2
    P = params["w_in"].shape[1]

    # Pad the context axis only to a sublane multiple (8): avoids 16x wasted
    # tanh work that lane-padding to 128 would cost when S is small.
    s_pad = max(8, _round_up(S, 8))
    if s_pad != S:
        ctx = jnp.pad(ctx, ((0, 0), (0, s_pad - S), (0, 0)))

    budget = _vmem_budget_bytes()
    bb, bt = _choose_tiles(B, T, s_pad, E, D, P, t_chunk, budget, block_b, block_t)
    assert bt % t_chunk == 0

    # Pad B / T to tile multiples (cdiv-style grid); padded rows produce
    # throwaway softmax rows that are sliced off below.
    t_pad = _round_up(T, bt)
    b_pad = _round_up(B, bb)
    dec = decoder_states
    if t_pad != T:
        dec = jnp.pad(dec, ((0, 0), (0, t_pad - T), (0, 0)))
    if b_pad != B:
        dec = jnp.pad(dec, ((0, b_pad - B), (0, 0), (0, 0)))
        ctx = jnp.pad(ctx, ((0, b_pad - B), (0, 0), (0, 0)))

    grid = (b_pad // bb, t_pad // bt)

    w_in, b_in = params["w_in"], params["b_in"]     # (E, P), (1, P)
    w_h, b_h = params["w_h"], params["b_h"]         # (D, P), (1, P)
    w2_row = params["w2"].reshape(1, P)             # (P, 1) -> (1, P) row

    kernel = functools.partial(pointer_net_kernel, s_valid=S, t_chunk=t_chunk)

    out_padded = pl.pallas_call(
        kernel,
        out_shape=jax.ShapeDtypeStruct((b_pad, t_pad, s_pad), jnp.float32),
        grid_spec=pltpu.PrefetchScalarGridSpec(
            num_scalar_prefetch=0,
            grid=grid,
            in_specs=[
                pl.BlockSpec((bb, s_pad, E), lambda b, t: (b, 0, 0)),
                pl.BlockSpec((bb, bt, D), lambda b, t: (b, t, 0)),
                pl.BlockSpec((E, P), lambda b, t: (0, 0)),
                pl.BlockSpec((1, P), lambda b, t: (0, 0)),
                pl.BlockSpec((D, P), lambda b, t: (0, 0)),
                pl.BlockSpec((1, P), lambda b, t: (0, 0)),
                pl.BlockSpec((1, P), lambda b, t: (0, 0)),
            ],
            out_specs=pl.BlockSpec((bb, bt, s_pad), lambda b, t: (b, t, 0)),
            scratch_shapes=[pltpu.VMEM((bb, s_pad, P), jnp.float32)],
        ),
        compiler_params=pltpu.CompilerParams(
            # t is the inner "arbitrary" axis so the hoisted ctx projection in
            # scratch is reused across all T tiles of a batch tile.
            dimension_semantics=("parallel", "arbitrary"),
            vmem_limit_bytes=budget,
        ),
    )(ctx, dec, w_in, b_in, w_h, b_h, w2_row)

    return out_padded[:B, :T, :S]


def xavier_uniform(key, fan_in, fan_out):
    # torch.nn.init.xavier_uniform on a (fan_out, fan_in) Linear weight;
    # we emit the transposed (fan_in, fan_out) layout used by the kernel.
    bound = math.sqrt(6.0 / (fan_in + fan_out))
    return jax.random.uniform(key, (fan_in, fan_out),
                              minval=-bound, maxval=bound, dtype=jnp.float32)


def make_params(key, encoder_hidden_dim, decoder_hidden_dim, ptrnet_hidden_dim):
    k1, k2, k3 = jax.random.split(key, 3)
    E = encoder_hidden_dim
    D = decoder_hidden_dim + encoder_hidden_dim
    P = ptrnet_hidden_dim
    return {
        "w_in": xavier_uniform(k1, E, P),
        "b_in": jnp.zeros((1, P), jnp.float32),
        "w_h": xavier_uniform(k2, D, P),
        "b_h": jnp.zeros((1, P), jnp.float32),
        "w2": xavier_uniform(k3, P, 1),
        "b2": jnp.zeros((1, 1), jnp.float32),
    }


def pointer_net_reference(ctx, decoder_states, params):
    ctx_t = ctx @ params["w_in"] + params["b_in"][0]                 # (B, S, P)
    dec_t = decoder_states @ params["w_h"] + params["b_h"][0]        # (B, T, P)
    h = jnp.tanh(ctx_t[:, None, :, :] + dec_t[:, :, None, :])        # (B, T, S, P)
    scores = jnp.einsum("btsp,po->bts", h, params["w2"]) + params["b2"][0, 0]
    return jax.nn.softmax(scores, axis=-1)


if __name__ == "__main__":
    # Small config consistent with the module's forward semantics.
    B, S, T = 2, 8, 8
    encoder_hidden_dim = 32
    decoder_hidden_dim = 32
    ptrnet_hidden_dim = 32

    key = jax.random.PRNGKey(0)
    kp, kc, kd = jax.random.split(key, 3)

    params = make_params(kp, encoder_hidden_dim, decoder_hidden_dim, ptrnet_hidden_dim)
    ctx = jax.random.normal(kc, (B, S, encoder_hidden_dim), jnp.float32)
    decoder_states = jax.random.normal(
        kd, (B, T, decoder_hidden_dim + encoder_hidden_dim), jnp.float32)

    out = pointer_net_forward(ctx, decoder_states, params)
    out = jax.block_until_ready(out)

    ref = pointer_net_reference(ctx, decoder_states, params)
    assert out.shape == (B, T, S)
    assert jnp.allclose(out, ref, atol=1e-3, rtol=1e-3), "mismatch vs JAX reference"
    assert jnp.allclose(jnp.sum(out, axis=-1), 1.0, atol=1e-3), "rows not normalized"

    print("KERNEL_OK")
</pallas_src>

<mosaic_0001>
module attributes {stable_mosaic.version = 11 : i64} {
  func.func @pointer_net_kernel(%arg0: i32, %arg1: i32, %arg2: memref<1x8x32xf32, #tpu.memory_space<vmem>>, %arg3: memref<1x8x64xf32, #tpu.memory_space<vmem>>, %arg4: memref<32x32xf32, #tpu.memory_space<vmem>>, %arg5: memref<1x32xf32, #tpu.memory_space<vmem>>, %arg6: memref<64x32xf32, #tpu.memory_space<vmem>>, %arg7: memref<1x32xf32, #tpu.memory_space<vmem>>, %arg8: memref<1x32xf32, #tpu.memory_space<vmem>>, %arg9: memref<1x8x8xf32, #tpu.memory_space<vmem>>, %arg10: memref<1x8x32xf32, #tpu.memory_space<vmem>>) attributes {dimension_semantics = [#tpu.dimension_semantics<parallel>, #tpu.dimension_semantics<arbitrary>], iteration_bounds = array<i64: 2, 1>, scalar_prefetch = 0 : i64, scratch_operands = 1 : i64, tpu.core_type = #tpu.core_type<tc>, window_params = [{transform_indices = @transform_0, window_bounds = array<i64: 1, 8, 32>}, {transform_indices = @transform_1, window_bounds = array<i64: 1, 8, 64>}, {pipeline_mode = #tpu.pipeline_mode<synchronous>, transform_indices = @transform_2, window_bounds = array<i64: 32, 32>}, {pipeline_mode = #tpu.pipeline_mode<synchronous>, transform_indices = @transform_3, window_bounds = array<i64: 1, 32>}, {pipeline_mode = #tpu.pipeline_mode<synchronous>, transform_indices = @transform_4, window_bounds = array<i64: 64, 32>}, {pipeline_mode = #tpu.pipeline_mode<synchronous>, transform_indices = @transform_5, window_bounds = array<i64: 1, 32>}, {pipeline_mode = #tpu.pipeline_mode<synchronous>, transform_indices = @transform_6, window_bounds = array<i64: 1, 32>}, {transform_indices = @transform_7, window_bounds = array<i64: 1, 8, 8>}]} {
    %c0_i32 = arith.constant 0 : i32
    %0 = arith.cmpi eq, %arg1, %c0_i32 : i32
    %1 = arith.extui %0 : i1 to i32
    %c0_i32_0 = arith.constant 0 : i32
    %2 = arith.cmpi ne, %1, %c0_i32_0 : i32
    scf.if %2 {
      %c0_17 = arith.constant 0 : index
      %c0_18 = arith.constant 0 : index
      %c0_19 = arith.constant 0 : index
      %37 = vector.load %arg2[%c0_17, %c0_18, %c0_19] : memref<1x8x32xf32, #tpu.memory_space<vmem>>, vector<1x8x32xf32>
      %38 = vector.shape_cast %37 : vector<1x8x32xf32> to vector<8x32xf32>
      %c0_20 = arith.constant 0 : index
      %c0_21 = arith.constant 0 : index
      %39 = vector.load %arg4[%c0_20, %c0_21] : memref<32x32xf32, #tpu.memory_space<vmem>>, vector<32x32xf32>
      %cst_22 = arith.constant dense<0.000000e+00> : vector<8x32xf32>
      %40 = tpu.matmul %38, %39, %cst_22 {dimension_numbers = #tpu.dot_dimension_numbers<[1], [0], [0], [1], [0, 0, 1, 1], [], []>} : vector<8x32xf32>, vector<32x32xf32>, vector<8x32xf32> -> vector<8x32xf32>
      %c0_23 = arith.constant 0 : index
      %c0_24 = arith.constant 0 : index
      %41 = vector.load %arg5[%c0_23, %c0_24] : memref<1x32xf32, #tpu.memory_space<vmem>>, vector<1x32xf32>
      %42 = vector.broadcast %41 : vector<1x32xf32> to vector<8x32xf32>
      %43 = arith.addf %40, %42 : vector<8x32xf32>
      %44 = vector.shape_cast %43 : vector<8x32xf32> to vector<1x8x32xf32>
      %c0_25 = arith.constant 0 : index
      %c0_26 = arith.constant 0 : index
      %c0_27 = arith.constant 0 : index
      %45 = vector.load %arg10[%c0_25, %c0_26, %c0_27] : memref<1x8x32xf32, #tpu.memory_space<vmem>>, vector<1x8x32xf32>
      tpu.vector_store %arg10[%c0_25, %c0_26, %c0_27], %44 {strides = array<i32>} : memref<1x8x32xf32, #tpu.memory_space<vmem>>, vector<1x8x32xf32>,
    } else {
    }
    %c0 = arith.constant 0 : index
    %c0_1 = arith.constant 0 : index
    %c0_2 = arith.constant 0 : index
    %3 = vector.load %arg10[%c0, %c0_1, %c0_2] : memref<1x8x32xf32, #tpu.memory_space<vmem>>, vector<1x8x32xf32>
    %c0_3 = arith.constant 0 : index
    %c0_4 = arith.constant 0 : index
    %4 = vector.load %arg8[%c0_3, %c0_4] : memref<1x32xf32, #tpu.memory_space<vmem>>, vector<1x32xf32>
    %c0_i32_5 = arith.constant 0 : i32
    %c8_i32 = arith.constant 8 : i32
    %5 = arith.muli %c0_i32_5, %c8_i32 : i32
    %6 = tpu.assume_multiple %5, 8 : i32
    %c0_6 = arith.constant 0 : index
    %7 = arith.index_cast %6 : i32 to index
    %c0_7 = arith.constant 0 : index
    %8 = vector.load %arg3[%c0_6, %7, %c0_7] : memref<1x8x64xf32, #tpu.memory_space<vmem>>, vector<1x8x64xf32>
    %9 = vector.shape_cast %8 : vector<1x8x64xf32> to vector<8x64xf32>
    %c0_8 = arith.constant 0 : index
    %c0_9 = arith.constant 0 : index
    %10 = vector.load %arg6[%c0_8, %c0_9] : memref<64x32xf32, #tpu.memory_space<vmem>>, vector<64x32xf32>
    %cst = arith.constant dense<0.000000e+00> : vector<8x32xf32>
    %11 = tpu.matmul %9, %10, %cst {dimension_numbers = #tpu.dot_dimension_numbers<[1], [0], [0], [1], [0, 0, 1, 1], [], []>} : vector<8x64xf32>, vector<64x32xf32>, vector<8x32xf32> -> vector<8x32xf32>
    %c0_10 = arith.constant 0 : index
    %c0_11 = arith.constant 0 : index
    %12 = vector.load %arg7[%c0_10, %c0_11] : memref<1x32xf32, #tpu.memory_space<vmem>>, vector<1x32xf32>
    %13 = vector.broadcast %12 : vector<1x32xf32> to vector<8x32xf32>
    %14 = arith.addf %11, %13 : vector<8x32xf32>
    %15 = vector.shape_cast %14 : vector<8x32xf32> to vector<1x8x32xf32>
    %16 = vector.shape_cast %3 : vector<1x8x32xf32> to vector<1x1x8x32xf32>
    %17 = vector.shape_cast %15 : vector<1x8x32xf32> to vector<1x8x1x32xf32>
    %18 = vector.broadcast %16 : vector<1x1x8x32xf32> to vector<1x8x8x32xf32>
    %19 = vector.broadcast %17 : vector<1x8x1x32xf32> to vector<1x8x8x32xf32>
    %20 = arith.addf %18, %19 : vector<1x8x8x32xf32>
    %21 = math.tanh %20 : vector<1x8x8x32xf32>
    %22 = vector.shape_cast %4 : vector<1x32xf32> to vector<1x1x1x32xf32>
    %23 = vector.broadcast %22 : vector<1x1x1x32xf32> to vector<1x8x8x32xf32>
    %24 = arith.mulf %21, %23 : vector<1x8x8x32xf32>
    %cst_12 = arith.constant dense<0.000000e+00> : vector<1x8x8xf32>
    %25 = vector.multi_reduction <add>, %24, %cst_12 [3] : vector<1x8x8x32xf32> to vector<1x8x8xf32>
    %cst_13 = arith.constant dense<0xFF800000> : vector<1x8xf32>
    %26 = vector.multi_reduction <maximumf>, %25, %cst_13 [2] : vector<1x8x8xf32> to vector<1x8xf32>
    %27 = vector.shape_cast %26 : vector<1x8xf32> to vector<1x8x1xf32>
    %28 = vector.broadcast %27 : vector<1x8x1xf32> to vector<1x8x8xf32>
    %29 = arith.subf %25, %28 : vector<1x8x8xf32>
    %30 = math.exp %29 : vector<1x8x8xf32>
    %cst_14 = arith.constant dense<0.000000e+00> : vector<1x8xf32>
    %31 = vector.multi_reduction <add>, %30, %cst_14 [2] : vector<1x8x8xf32> to vector<1x8xf32>
    %32 = vector.shape_cast %31 : vector<1x8xf32> to vector<1x8x1xf32>
    %33 = vector.broadcast %32 : vector<1x8x1xf32> to vector<1x8x8xf32>
    %34 = arith.divf %30, %33 : vector<1x8x8xf32>
    %c0_15 = arith.constant 0 : index
    %35 = arith.index_cast %6 : i32 to index
    %c0_16 = arith.constant 0 : index
    %36 = vector.load %arg9[%c0_15, %35, %c0_16] : memref<1x8x8xf32, #tpu.memory_space<vmem>>, vector<1x8x8xf32>
    tpu.vector_store %arg9[%c0_15, %35, %c0_16], %34 {strides = array<i32>} : memref<1x8x8xf32, #tpu.memory_space<vmem>>, vector<1x8x8xf32>,
    %c1_i32 = arith.constant 1 : i32
    return
  }
  func.func @transform_0(%arg0: i32, %arg1: i32) -> (i32, i32, i32) {
    %c0_i32 = arith.constant 0 : i32
    %c0_i32_0 = arith.constant 0 : i32
    %c0_i32_1 = arith.constant 0 : i32
    return %arg0, %c0_i32, %c0_i32_0 : i32, i32, i32
  }
  func.func @transform_1(%arg0: i32, %arg1: i32) -> (i32, i32, i32) {
    %c0_i32 = arith.constant 0 : i32
    %c0_i32_0 = arith.constant 0 : i32
    return %arg0, %arg1, %c0_i32 : i32, i32, i32
  }
  func.func @transform_2(%arg0: i32, %arg1: i32) -> (i32, i32) {
    %c0_i32 = arith.constant 0 : i32
    %c0_i32_0 = arith.constant 0 : i32
    %c0_i32_1 = arith.constant 0 : i32
    return %c0_i32, %c0_i32_0 : i32, i32
  }
  func.func @transform_3(%arg0: i32, %arg1: i32) -> (i32, i32) {
    %c0_i32 = arith.constant 0 : i32
    %c0_i32_0 = arith.constant 0 : i32
    %c0_i32_1 = arith.constant 0 : i32
    return %c0_i32, %c0_i32_0 : i32, i32
  }
  func.func @transform_4(%arg0: i32, %arg1: i32) -> (i32, i32) {
    %c0_i32 = arith.constant 0 : i32
    %c0_i32_0 = arith.constant 0 : i32
    %c0_i32_1 = arith.constant 0 : i32
    return %c0_i32, %c0_i32_0 : i32, i32
  }
  func.func @transform_5(%arg0: i32, %arg1: i32) -> (i32, i32) {
    %c0_i32 = arith.constant 0 : i32
    %c0_i32_0 = arith.constant 0 : i32
    %c0_i32_1 = arith.constant 0 : i32
    return %c0_i32, %c0_i32_0 : i32, i32
  }
  func.func @transform_6(%arg0: i32, %arg1: i32) -> (i32, i32) {
    %c0_i32 = arith.constant 0 : i32
    %c0_i32_0 = arith.constant 0 : i32
    %c0_i32_1 = arith.constant 0 : i32
    return %c0_i32, %c0_i32_0 : i32, i32
  }
  func.func @transform_7(%arg0: i32, %arg1: i32) -> (i32, i32, i32) {
    %c0_i32 = arith.constant 0 : i32
    %c0_i32_0 = arith.constant 0 : i32
    return %arg0, %arg1, %c0_i32 : i32, i32, i32
  }
}

</mosaic_0001>

<bundles_post_ra>
// kernel: tpu_custom_call.1
= control target key start
LH: loop header
LB: loop body
LE: loop exit
PB: predicated region body
PF: predicated region fallthrough
CT: control target
= control target key end

     0   :  { %12 = vsyncpa [#allocation4], 0  ;;  %s1690_s0 = inlined_call_operand.vmem [shape: f32[2,8,32], index: 0, kind: input, shape index: {}]   ;;  %s1691_s1 = inlined_call_operand.vmem [shape: f32[2,8,64], index: 1, kind: input, shape index: {}]   ;;  %s1692_s2 = inlined_call_operand.vmem [shape: f32[32,32], index: 2, kind: input, shape index: {}]   ;;  %s1693_s3 = inlined_call_operand.vmem [shape: f32[1,32], index: 3, kind: input, shape index: {}]   ;;  %s1694_s4 = inlined_call_operand.vmem [shape: f32[64,32], index: 4, kind: input, shape index: {}]   ;;  %s1695_s5 = inlined_call_operand.vmem [shape: f32[1,32], index: 5, kind: input, shape index: {}]   ;;  %s1696_s6 = inlined_call_operand.vmem [shape: f32[1,32], index: 6, kind: input, shape index: {}]   ;;  %s1697_s7 = inlined_call_operand.hbm [shape: f32[2,8,8], index: 7, kind: output, shape index: {}]  }
   0x1   :  { %14 = vsyncpa [#allocation4 + $0x1], 0  ;;  %s1388_s24 = smov 0   ;;  %s1390_s25 = smov 0  }
   0x2   :  { %s1392_s26 = smov 0   ;;  %s1394_s27 = smov 0  }
   0x3   :  { %s1396_s28 = smov 0   ;;  %s1398_s29 = smov 0  }
   0x4 LB: > { %s1073_s30 = sadd.s32 4294967295, %s1340_s29   ;;  %s1074_s8 = sadd.s32 4294967294, %s1340_s29   ;;  %s1340_s29 = sphi %s1398_s29, %s20_s29   ;;  %s1336_s28 = sphi %s1396_s28, %s1704_s28   ;;  %s1332_s27 = sphi %s1394_s27, %s1703_s27   ;;  %s1328_s26 = sphi %s1392_s26, %s1702_s26   ;;  %s1324_s25 = sphi %s1390_s25, %s1701_s25   ;;  %s1320_s24 = sphi %s1388_s24, %s1700_s24  }
   0x5   : > { %s32_s9 = sadd.s32 1, %s1336_s28  ;;  %s200_s10 = sadd.s32 1, %s1328_s26 }
   0x6   : > { %p34_p0 = scmp.ge.s32.totalorder %s32_s9, 2  ;;  %p210_p1 = scmp.ne.s32.totalorder %s1328_s26, %s1324_s25 }
   0x7   : > { %p211_p2 = scmp.eq.s32.totalorder %s1073_s30, 1  ;;  %p216_p3 = scmp.ne.s32.totalorder %s1324_s25, %s1320_s24 }
   0x8   : > { %s1706_s9 = smov (%p34_p0, %s32_s9), 0  ;;  %p217_p5 = scmp.eq.s32.totalorder %s1074_s8, 1 }
   0x9   : > { %p1428_p4 = por %p211_p2, %p210_p1  ;;  %s195_s12 = ssub.s32 %s1336_s28, %s1706_s9 }
   0xa   : > { %p1077_p6 = scmp.ge.s32.totalorder %s1340_s29, 1  ;;  %p198_p7 = scmp.eq.s32.totalorder %s195_s12, 0 }
   0xb   : > { %p1435_p8 = por %p217_p5, %p216_p3  ;;  %p267_p9 = scmp.lt.s32.totalorder %s1340_s29, 3 }
   0xc   : > { %s1441_s14 = scalar_select %p198_p7, %s1328_s26, %s200_s10  }
   0xd   : > { %p268_p10 = pnand %p1077_p6, %p267_p9 }
   0xe   : > { %v410_v0 = vld [vmem:[%s1694_s4] sm:$0xff] (!%p268_p10)  ;;  %v411_v1 = vld [vmem:[%s1694_s4 + $0x8] sm:$0xff] (!%p268_p10)  ;;  %v412_v2 = vld [vmem:[%s1694_s4 + $0x10] sm:$0xff] (!%p268_p10)  ;;  %v1342_v3 = vmov (!%p268_p10), 0.0|0.0   ;;  %p305_p11 = scmp.lt.s32.totalorder (!%p268_p10), %s1332_s27, 1  ;;  %vm1343_vm0 = vmmov (!%p268_p10), 0   ;;  %v504_v25 = vlaneseq (!%p268_p10) }
   0xf   : > { %271 = sbr.rel (%p268_p10) target bundleno = 1075 (0x433), region = 48  ;;  %1140 = vmatprep.subr.bf16.mxu1 (!%p268_p10), %v1342_v3  ;;  %v1141_v4 = vpack.c.bf16 (!%p268_p10), %v411_v1, %v410_v0  ;;  %v413_v5 = vld [vmem:[%s1694_s4 + $0x18] sm:$0xff] (!%p268_p10)  ;;  %1134 = vmatprep.subr.bf16.mxu0 (!%p268_p10), %v1342_v3  ;;  %v321_v6 = vld [vmem:[%s1692_s2] sm:$0xff] (!%p268_p10)  ;;  %v322_v7 = vld [vmem:[%s1692_s2 + $0x8] sm:$0xff] (!%p268_p10)  ;;  %v1344_v10 = vmov (!%p268_p10), 0.0   ;;  %vm332_vm1 = vcmask (!%p268_p10), 261120  }
  0x10   : > { %v1135_v8 = vpack.c.bf16 (!%p268_p10), %v322_v7, %v321_v6  ;;  %v323_v9 = vld [vmem:[%s1692_s2 + $0x10] sm:$0xff] (!%p268_p10)  ;;  %1112 = vmatprep.mubr.msk.f32.mxu0 (!%p268_p10), %vm1343_vm0, %v1344_v10  ;;  %1131 = vmatprep.mubr.msk.f32.mxu1 (!%p268_p10), %vm1343_vm0, %v1344_v10  ;;  %v1144_v11 = vpack.c.bf16 (!%p268_p10), %v413_v5, %v412_v2  ;;  %v324_v12 = vld [vmem:[%s1692_s2 + $0x18] sm:$0xff] (!%p268_p10)  ;;  %v414_v13 = vld [vmem:[%s1694_s4 + $0x20] sm:$0xff] (!%p268_p10)  ;;  %vm425_vm2 = vcmask (!%p268_p10), 523264   ;;  %v1345_v23 = vmov (!%p268_p10), 1966171168  }
  0x11   : > { %1142 = vmatpush3.bf16.msra.mxu1 (!%p268_p10), %v1141_v4  ;;  %v415_v14 = vld [vmem:[%s1694_s4 + $0x28] sm:$0xff] (!%p268_p10)  ;;  %v1138_v15 = vpack.c.bf16 (!%p268_p10), %v324_v12, %v323_v9  ;;  %v416_v17 = vld [vmem:[%s1694_s4 + $0x30] sm:$0xff] (!%p268_p10)  ;;  %v417_v18 = vld [vmem:[%s1694_s4 + $0x38] sm:$0xff] (!%p268_p10)  ;;  %v502_v24 = vunpack.c.l.s4 (!%p268_p10), %v1345_v23  ;;  %v1492_v30 = vshrl.u32 (!%p268_p10), %v504_v25, 7  ;;  %vm686_vm3 = vcmask (!%p268_p10), 1041409   ;;  %s302_s12 = sand.u32 (!%p268_p10), 1, %s1324_s25  }
  0x12   : > { %1143 = vmatprep.subr.bf16.mxu1 (!%p268_p10), %v1342_v3  ;;  %1136 = vmatpush3.bf16.msra.mxu0 (!%p268_p10), %v1135_v8  ;;  %v1147_v16 = vpack.c.bf16 (!%p268_p10), %v415_v14, %v414_v13  ;;  %v1150_v20 = vpack.c.bf16 (!%p268_p10), %v417_v18, %v416_v17  ;;  %v1081_v22 = vld [vmem:[%s1693_s3] ss:$0 sm:$0xff] (!%p268_p10)  ;;  %vm688_vm4 = vcmask (!%p268_p10), 1042434   ;;  %vm690_vm5 = vcmask (!%p268_p10), 1043459   ;;  %s1078_s15 = sshll.u32 (!%p268_p10), %s302_s12, 3  ;;  %s1087_s16 = sshll.u32 (!%p268_p10), %s1332_s27, 7 }
  0x13   : > { %1137 = vmatprep.subr.bf16.mxu0 (!%p268_p10), %v1342_v3  ;;  %v503_v29 = vunpack.c.0.s8 (!%p268_p10), %v502_v24  ;;  %v1083_v31 = vld [vmem:[%s1695_s5] ss:$0 sm:$0xff] (!%p268_p10)  ;;  %v1500_v38 = vsub.s32 (!%p268_p10), 0, %v1492_v30  ;;  %vm692_vm6 = vcmask (!%p268_p10), 1044484   ;;  %vm694_vm7 = vcmask (!%p268_p10), 1045509   ;;  %s304_s17 = scalar_lea.vmem (!%p268_p10), [#allocation3], %s1078_s15  ;;  %s1641_s21 = scalar_lea.hbm (!%p268_p10), %s1697_s7, %s1087_s16 }
  0x14   : > { %vm696_vm8 = vcmask (!%p268_p10), 1046534   ;;  %vm698_vm9 = vcmask (!%p268_p10), 1047559   ;;  %vm701_vm10 = vcmask (!%p268_p10), 64512  }
  0x15   : > { %1145 = vmatpush3.bf16.msra.mxu1 (!%p268_p10), %v1144_v11  ;;  %v506_v32 = vsub.s32 (!%p268_p10), %v503_v29, %v1492_v30  ;;  %v653_v29 = vand.u32 (!%p268_p10), 127, %v504_v25 }
  0x16   : > { %s306_s18 = scalar_select %p305_p11, %s1332_s27, 1  ;;  %1146 = vmatprep.subr.bf16.mxu1 %v1342_v3  ;;  %1139 = vmatpush3.bf16.msra.mxu0 %v1138_v15 }
  0x17   : > { %s976_s27 = scalar_lea.sflag [#allocation4], %s302_s12 }
  0x18   : > { %s1079_s23 = sshll.u32 %s306_s18, 3  ;;  %s990_s18 = sshll.u32 %s304_s17, 4  ;;  %s1643_s18 = int_to_ptr.vmem [resolvable:$true] %s990_s18 }
  0x19   : > { %s308_s10 = scalar_lea.vmem %s1690_s0, %s1079_s23  ;;  %1148 = vmatpush3.bf16.msra.mxu1 %v1147_v16  ;;  %s315_s20 = scalar_lea.vmem %s1691_s1, %s1079_s23 }
  0x1a   : > { %v320_v19 = vld [vmem:[%s308_s10] sm:$0xff]  ;;  %1149 = vmatprep.subr.bf16.mxu1 %v1342_v3  ;;  %s1262_s22 = scalar_lea.vmem %s1643_s18, 128  ;;  %s1347_s23 = smov [#allocation3]  }
  0x1b   : > { %1113 = vmatmul.mubr.msk.f32.vlgmr.msra.gmra.mrb[0].mxu0 %vm332_vm1, %v320_v19  ;;  %v409_v21 = vld [vmem:[%s315_s20] sm:$0xff]  ;;  %p1263_p12 = scmp.ne.s32.totalorder %s1643_s18, %s1262_s22  ;;  %s1266_s30 = sshll.u32 %s1347_s23, 4  ;;  %s1267_s30 = int_to_ptr.vmem [resolvable:$false] %s1266_s30 }
  0x1c   : > { %v1085_v3 = vld [vmem:[%s1696_s6] ss:$0 sm:$0xff]  ;;  %s1268_s8 = scalar_lea.vmem %s1267_s30, 256  ;;  %p1269_p1 = scmp.lt.s32.totalorder %s1643_s18, %s1267_s30 }
  0x1d   : > { %1151 = vmatpush3.bf16.msra.mxu1 %v1150_v20  ;;  %p1264_p13 = pnand %p1263_p12, %p1428_p4  ;;  %p1270_p2 = scmp.lt.s32.totalorder %s1268_s8, %s1262_s22 }
  0x1f   : > { %p1265_p0 = pneg %p1264_p13  ;;  %p1271_p3 = por %p1270_p2, %p1269_p1 }
  0x20   : > { %1132 = vmatmul.mubr.msk.f32.vlgmr.msra.gmra.mrb[0].mxu1 %vm425_vm2, %v409_v21 }
  0x21   : > { %p1272_p5 = pnand %p1271_p3, %p1265_p0 }
  0xee   : > { %v402_v26 = vpop.f32.mrb[0].mxu0 }
  0xef   : > { %v403_v27 = vadd.f32 %v1081_v22, %v402_v26  ;;  %v1114_v28 = vpop.f32.mrb[1].mxu0 }
  0xf1   : > { %406 = vst.msk [vmem:[#allocation2] sm:$0xff] %vm332_vm1, %v403_v27 }
  0xf3   : > { %v495_v33 = vpop.f32.mrb[0].mxu1 }
  0xf4   : > { %v496_v34 = vadd.f32 %v1083_v31, %v495_v33  ;;  %v1133_v35 = vpop.f32.mrb[1].mxu1 }
  0xf6   : > { %v500_v36 = vcombine.high %v496_v34, %v496_v34  ;;  %v507_v37 = vrot.slane %v496_v34, %v506_v32 }
  0xf8   : > { %v514_v39 = vrot.slane %v500_v36, %v506_v32  ;;  %v515_v40 = vcombine.high %v507_v37, %v507_v37  ;;  %v523_v41 = vrot.slane %v507_v37, %v506_v32  ;;  %v407_v42 = vld [vmem:[#allocation2] sm:$0xff] }
  0xfa   : > { %v516_v43 = vcombine.high %v514_v39, %v514_v39  ;;  %v530_v44 = vrot.slane %v514_v39, %v506_v32  ;;  %v537_v45 = vrot.slane %v515_v40, %v506_v32  ;;  %v545_v46 = vcombine.high %v523_v41, %v523_v41 }
  0xfb   : > { %v552_v47 = vrot.slane %v523_v41, %v1500_v38 }
  0xfc   : > { %v544_v48 = vrot.slane %v516_v43, %v506_v32  ;;  %v546_v49 = vcombine.high %v530_v44, %v530_v44  ;;  %v547_v50 = vcombine.high %v537_v45, %v537_v45  ;;  %v556_v51 = vrot.slane %v537_v45, %v1500_v38 }
  0xfd   : > { %v560_v52 = vrot.slane %v545_v46, %v1500_v38  ;;  %v568_v53 = vrot.slane %v530_v44, %v1500_v38  ;;  %v589_v54 = vadd.f32 %v552_v47, %v407_v42  ;;  %v1523_v32 = vsub.s32 %v653_v29, %v1492_v30 }
  0xfe   : > { %v548_v55 = vcombine.high %v544_v48, %v544_v48  ;;  %v564_v56 = vrot.slane %v547_v50, %v1500_v38  ;;  %v572_v57 = vrot.slane %v544_v48, %v1500_v38  ;;  %v576_v58 = vrot.slane %v546_v49, %v1500_v38 }
  0xff   : > { %v590_v59 = vadd.f32 %v556_v51, %v407_v42  ;;  %v591_v60 = vadd.f32 %v560_v52, %v407_v42  ;;  %1214 = vtanh.f32 %v589_v54  ;;  %v593_v62 = vadd.f32 %v568_v53, %v407_v42 }
 0x100   : > { %v592_v61 = vadd.f32 %v564_v56, %v407_v42  ;;  %v580_v63 = vrot.slane %v548_v55, %v1500_v38  ;;  %v594_v0 = vadd.f32 %v572_v57, %v407_v42  ;;  %v595_v1 = vadd.f32 %v576_v58, %v407_v42 }
 0x101   : > { %1216 = vtanh.f32 %v590_v59  ;;  %v1346_v56 = vmov 0   ;;  %v712_v57 = vsub.s32 1, %v1492_v30  ;;  %v716_v58 = vsub.s32 2, %v1492_v30 }
 0x102   : > { %1218 = vtanh.f32 %v591_v60  ;;  %v596_v2 = vadd.f32 %v580_v63, %v407_v42  ;;  %1213 = vset.pattern.permute.xlu0 %v1346_v56  ;;  %1212 = vset.pattern.permute.xlu1 %v1346_v56  ;;  %v720_v59 = vsub.s32 3, %v1492_v30 }
 0x103   : > { %1220 = vtanh.f32 %v592_v61 }
 0x104   : > { %1222 = vtanh.f32 %v593_v62 }
 0x105   : > { %1224 = vtanh.f32 %v594_v0  ;;  %v724_v0 = vsub.s32 4, %v1492_v30 }
 0x106   : > { %1226 = vtanh.f32 %v595_v1 }
 0x107   : > { %1228 = vtanh.f32 %v596_v2 }
 0x109   : > { %v1215_v4 = vpop.eup %1214 }
 0x10a   : > { %v611_v5 = vmul.f32 %v1215_v4, %v1085_v3 }
 0x10b   : > { %v1217_v6 = vpop.eup %1216 }
 0x10c   : > { %v1219_v7 = vpop.eup %1218  ;;  %v620_v8 = vsel %vm332_vm1, %v611_v5, 0.0  ;;  %v612_v9 = vmul.f32 %v1217_v6, %v1085_v3 }
 0x10d   : > { %v1221_v10 = vpop.eup %1220  ;;  %621 = vadd.xlane.f32.xlu0 %v620_v8  ;;  %v613_v11 = vmul.f32 %v1219_v7, %v1085_v3  ;;  %v728_v7 = vsub.s32 5, %v1492_v30 }
 0x10e   : > { %v1223_v12 = vpop.eup %1222  ;;  %v614_v14 = vmul.f32 %v1221_v10, %v1085_v3  ;;  %v623_v16 = vsel %vm332_vm1, %v612_v9, 0.0 }
 0x10f   : > { %v626_v13 = vsel %vm332_vm1, %v613_v11, 0.0  ;;  %v1225_v15 = vpop.eup %1224  ;;  %v615_v17 = vmul.f32 %v1223_v12, %v1085_v3  ;;  %v732_v11 = vsub.s32 6, %v1492_v30 }
 0x110   : > { %627 = vadd.xlane.f32.xlu1 %v626_v13  ;;  %v1227_v18 = vpop.eup %1226  ;;  %v629_v19 = vsel %vm332_vm1, %v614_v14, 0.0  ;;  %v616_v20 = vmul.f32 %v1225_v15, %v1085_v3  ;;  %v736_v15 = vsub.s32 7, %v1492_v30 }
 0x111   : > { %624 = vadd.xlane.f32.xlu0 %v623_v16  ;;  %v1229_v21 = vpop.eup %1228  ;;  %v632_v22 = vsel %vm332_vm1, %v615_v17, 0.0  ;;  %v617_v23 = vmul.f32 %v1227_v18, %v1085_v3 }
 0x112   : > { %v635_v24 = vsel %vm332_vm1, %v616_v20, 0.0  ;;  %v618_v26 = vmul.f32 %v1229_v21, %v1085_v3 }
 0x113   : > { %v638_v27 = vsel %vm332_vm1, %v617_v23, 0.0 }
 0x114   : > { %630 = vadd.xlane.f32.xlu1 %v629_v19  ;;  %v641_v28 = vsel %vm332_vm1, %v618_v26, 0.0 }
 0x115   : > { %633 = vadd.xlane.f32.xlu0 %v632_v22 }
 0x118   : > { %636 = vadd.xlane.f32.xlu1 %v635_v24 }
 0x119   : > { %639 = vadd.xlane.f32.xlu0 %v638_v27 }
 0x11c   : > { %642 = vadd.xlane.f32.xlu1 %v641_v28 }
 0x19a   : > { %v622_v31 = vpop.xlane.xlu0 %621 }
 0x19b   : > { %v657_v35 = vrot.slane %v622_v31, %v1523_v32 }
 0x19d   : > { %v628_v33 = vpop.xlane.xlu1 %627 }
 0x19e   : > { %v625_v34 = vpop.xlane.xlu0 %624  ;;  %v665_v37 = vrot.slane %v628_v33, %v1523_v32 }
 0x19f   : > { %v661_v36 = vrot.slane %v625_v34, %v1523_v32 }
 0x1a1   : > { %v687_v39 = vsel %vm686_vm3, %v661_v36, %v657_v35  ;;  %v631_v40 = vpop.xlane.xlu1 %630 }
 0x1a2   : > { %v669_v25 = vrot.slane %v631_v40, %v1523_v32  ;;  %v689_v41 = vsel %vm688_vm4, %v665_v37, %v687_v39  ;;  %v634_v42 = vpop.xlane.xlu0 %633 }
 0x1a3   : > { %v673_v43 = vrot.slane %v634_v42, %v1523_v32 }
 0x1a4   : > { %v691_v44 = vsel %vm690_vm5, %v669_v25, %v689_v41 }
 0x1a5   : > { %v693_v45 = vsel %vm692_vm6, %v673_v43, %v691_v44  ;;  %v637_v46 = vpop.xlane.xlu1 %636 }
 0x1a6   : > { %v677_v47 = vrot.slane %v637_v46, %v1523_v32  ;;  %v640_v48 = vpop.xlane.xlu0 %639 }
 0x1a7   : > { %v681_v49 = vrot.slane %v640_v48, %v1523_v32 }
 0x1a8   : > { %v695_v50 = vsel %vm694_vm7, %v677_v47, %v693_v45 }
 0x1a9   : > { %v643_v51 = vpop.xlane.xlu1 %642  ;;  %v697_v52 = vsel %vm696_vm8, %v681_v49, %v695_v50 }
 0x1aa   : > { %v685_v53 = vrot.slane %v643_v51, %v1523_v32 }
 0x1ac   : > { %v699_v54 = vsel %vm698_vm9, %v685_v53, %v697_v52 }
 0x1ad   : > { %v702_v55 = vsel %vm701_vm10, %v699_v54, -inf }
 0x1ae   : > { %703 = vmax.xlane.f32.xlu0 %v702_v55 }
 0x23b   : > { %v704_v60 = vpop.xlane.xlu0 %703 }
 0x23c   : > { %v709_v61 = vrot.slane %v704_v60, %v1500_v38  ;;  %v713_v62 = vrot.slane %v704_v60, %v712_v57  ;;  %v717_v63 = vrot.slane %v704_v60, %v716_v58  ;;  %v721_v1 = vrot.slane %v704_v60, %v720_v59 }
 0x23d   : > { %v725_v8 = vrot.slane %v704_v60, %v724_v0  ;;  %v729_v12 = vrot.slane %v704_v60, %v728_v7  ;;  %v733_v16 = vrot.slane %v704_v60, %v732_v11  ;;  %v737_v21 = vrot.slane %v704_v60, %v736_v15 }
 0x23e   : > { %v746_v2 = vsub.f32 %v622_v31, %v709_v61  ;;  %v747_v3 = vsub.f32 %v625_v34, %v713_v62  ;;  %v748_v4 = vsub.f32 %v628_v33, %v717_v63  ;;  %v749_v9 = vsub.f32 %v631_v40, %v721_v1 }
 0x23f   : > { %v750_v13 = vsub.f32 %v634_v42, %v725_v8  ;;  %v751_v17 = vsub.f32 %v637_v46, %v729_v12  ;;  %v752_v22 = vsub.f32 %v640_v48, %v733_v16  ;;  %v753_v26 = vsub.f32 %v643_v51, %v737_v21 }
 0x240   : > { %v754_v5 = vmul.f32 1.442695, %v746_v2  ;;  %v756_v6 = vmul.f32 1.442695, %v747_v3  ;;  %v758_v10 = vmul.f32 1.442695, %v748_v4 }
 0x241   : > { %v760_v14 = vmul.f32 1.442695, %v749_v9  ;;  %v762_v18 = vmul.f32 1.442695, %v750_v13  ;;  %v764_v23 = vmul.f32 1.442695, %v751_v17 }
 0x242   : > { %1230 = vpow2.f32 %v754_v5  ;;  %v766_v27 = vmul.f32 1.442695, %v752_v22  ;;  %v768_v29 = vmul.f32 1.442695, %v753_v26 }
 0x243   : > { %1232 = vpow2.f32 %v756_v6 }
 0x244   : > { %1234 = vpow2.f32 %v758_v10 }
 0x245   : > { %1236 = vpow2.f32 %v760_v14 }
 0x246   : > { %1238 = vpow2.f32 %v762_v18 }
 0x247   : > { %1240 = vpow2.f32 %v764_v23 }
 0x248   : > { %1242 = vpow2.f32 %v766_v27 }
 0x249   : > { %1244 = vpow2.f32 %v768_v29 }
 0x24c   : > { %v1231_v19 = vpop.eup %1230 }
 0x24d   : > { %v1561_v20 = vpop.eup %1232  ;;  %779 = vperm.xlu1 %1212, %v1231_v19  }
 0x24e   : > { %782 = vperm.xlu0 %1213, %v1561_v20   ;;  %v1566_v24 = vpop.eup %1234 }
 0x24f   : > { %v1569_v28 = vpop.eup %1236 }
 0x250   : > { %v1572_v31 = vpop.eup %1238 }
 0x251   : > { %785 = vperm.xlu1 %1212, %v1566_v24   ;;  %v1575_v33 = vpop.eup %1240 }
 0x252   : > { %v1578_v34 = vpop.eup %1242 }
 0x253   : > { %v1581_v35 = vpop.eup %1244 }
 0x255   : > { %788 = vperm.xlu1 %1212, %v1569_v28  }
 0x259   : > { %791 = vperm.xlu1 %1212, %v1572_v31  }
 0x25d   : > { %794 = vperm.xlu1 %1212, %v1575_v33  }
 0x261   : > { %797 = vperm.xlu1 %1212, %v1578_v34  }
 0x265   : > { %800 = vperm.xlu1 %1212, %v1581_v35  }
 0x2cc   : > { %v780_v36 = vpop.permute.xlu1 %779 }
 0x2cd   : > { %v783_v25 = vpop.permute.xlu0 %782  ;;  %v805_v43 = vrot.slane %v780_v36, %v1523_v32 }
 0x2ce   : > { %v809_v42 = vrot.slane %v783_v25, %v1523_v32 }
 0x2d0   : > { %v786_v37 = vpop.permute.xlu1 %785  ;;  %v834_v48 = vsel %vm686_vm3, %v809_v42, %v805_v43 }
 0x2d1   : > { %v813_v44 = vrot.slane %v786_v37, %v1523_v32 }
 0x2d3   : > { %v835_v50 = vsel %vm688_vm4, %v813_v44, %v834_v48 }
 0x2d4   : > { %v789_v39 = vpop.permute.xlu1 %788 }
 0x2d5   : > { %v817_v45 = vrot.slane %v789_v39, %v1523_v32 }
 0x2d7   : > { %v836_v52 = vsel %vm690_vm5, %v817_v45, %v835_v50 }
 0x2d8   : > { %v792_v40 = vpop.permute.xlu1 %791 }
 0x2d9   : > { %v821_v46 = vrot.slane %v792_v40, %v1523_v32 }
 0x2db   : > { %v837_v53 = vsel %vm692_vm6, %v821_v46, %v836_v52 }
 0x2dc   : > { %v795_v41 = vpop.permute.xlu1 %794 }
 0x2dd   : > { %v825_v49 = vrot.slane %v795_v41, %v1523_v32 }
 0x2df   : > { %v838_v55 = vsel %vm694_vm7, %v825_v49, %v837_v53 }
 0x2e0   : > { %v798_v47 = vpop.permute.xlu1 %797 }
 0x2e1   : > { %v829_v51 = vrot.slane %v798_v47, %v1523_v32 }
 0x2e3   : > { %v839_v60 = vsel %vm696_vm8, %v829_v51, %v838_v55 }
 0x2e4   : > { %v801_v54 = vpop.permute.xlu1 %800 }
 0x2e5   : > { %v833_v56 = vrot.slane %v801_v54, %v1523_v32 }
 0x2e7   : > { %v840_v61 = vsel %vm698_vm9, %v833_v56, %v839_v60 }
 0x2e8   : > { %v842_v62 = vsel %vm701_vm10, %v840_v61, 0.0 }
 0x2e9   : > { %843 = vadd.xlane.f32.xlu1 %v842_v62 }
 0x376   : > { %v844_v63 = vpop.xlane.xlu1 %843 }
 0x377   : > { %v849_v1 = vrot.slane %v844_v63, %v1500_v38  ;;  %v853_v2 = vrot.slane %v844_v63, %v712_v57  ;;  %v857_v3 = vrot.slane %v844_v63, %v716_v58  ;;  %v861_v4 = vrot.slane %v844_v63, %v720_v59 }
 0x378   : > { %v865_v6 = vrot.slane %v844_v63, %v724_v0  ;;  %v869_v38 = vrot.slane %v844_v63, %v728_v7  ;;  %v873_v58 = vrot.slane %v844_v63, %v732_v11  ;;  %v877_v0 = vrot.slane %v844_v63, %v736_v15 }
 0x379   : > { %1246 = vrcp.f32 %v849_v1 }
 0x37a   : > { %1248 = vrcp.f32 %v853_v2 }
 0x37b   : > { %1250 = vrcp.f32 %v857_v3 }
 0x37c   : > { %1252 = vrcp.f32 %v861_v4 }
 0x37d   : > { %1254 = vrcp.f32 %v865_v6 }
 0x37e   : > { %1256 = vrcp.f32 %v869_v38 }
 0x37f   : > { %1258 = vrcp.f32 %v873_v58 }
 0x380   : > { %1260 = vrcp.f32 %v877_v0 }
 0x383   : > { %v1247_v5 = vpop.eup %1246 }
 0x384   : > { %v887_v8 = vmul.f32 %v1247_v5, %v1231_v19  ;;  %v1249_v9 = vpop.eup %1248 }
 0x385   : > { %v889_v57 = vmul.f32 %v1249_v9, %v1561_v20  ;;  %v1251_v10 = vpop.eup %1250 }
 0x386   : > { %911 = vperm.xlu0 %1213, %v887_v8   ;;  %v891_v59 = vmul.f32 %v1251_v10, %v1566_v24  ;;  %v1253_v12 = vpop.eup %1252 }
 0x387   : > { %v893_v13 = vmul.f32 %v1253_v12, %v1569_v28  ;;  %v1255_v14 = vpop.eup %1254 }
 0x388   : > { %v895_v7 = vmul.f32 %v1255_v14, %v1572_v31  ;;  %v1257_v16 = vpop.eup %1256 }
 0x389   : > { %v897_v11 = vmul.f32 %v1257_v16, %v1575_v33  ;;  %v1259_v17 = vpop.eup %1258 }
 0x38a   : > { %914 = vperm.xlu0 %1213, %v889_v57   ;;  %v899_v18 = vmul.f32 %v1259_v17, %v1578_v34  ;;  %v1261_v19 = vpop.eup %1260 }
 0x38b   : > { %v901_v30 = vmul.f32 %v1261_v19, %v1581_v35 }
 0x38e   : > { %917 = vperm.xlu0 %1213, %v891_v59  }
 0x392   : > { %920 = vperm.xlu0 %1213, %v893_v13  }
 0x396   : > { %923 = vperm.xlu0 %1213, %v895_v7  }
 0x39a   : > { %926 = vperm.xlu0 %1213, %v897_v11  }
 0x39e   : > { %929 = vperm.xlu0 %1213, %v899_v18  }
 0x3a2   : > { %932 = vperm.xlu0 %1213, %v901_v30  }
 0x405   : > { %v912_v15 = vpop.permute.xlu0 %911 }
 0x406   : > { %v937_v28 = vrot.slane %v912_v15, %v1523_v32 }
 0x409   : > { %v915_v20 = vpop.permute.xlu0 %914 }
 0x40a   : > { %v941_v26 = vrot.slane %v915_v20, %v1523_v32 }
 0x40c   : > { %v966_v34 = vsel %vm686_vm3, %v941_v26, %v937_v28 }
 0x40d   : > { %v918_v21 = vpop.permute.xlu0 %917 }
 0x40e   : > { %v945_v27 = vrot.slane %v918_v21, %v1523_v32 }
 0x410   : > { %v967_v36 = vsel %vm688_vm4, %v945_v27, %v966_v34 }
 0x411   : > { %v921_v22 = vpop.permute.xlu0 %920 }
 0x412   : > { %v949_v29 = vrot.slane %v921_v22, %v1523_v32 }
 0x414   : > { %v968_v39 = vsel %vm690_vm5, %v949_v29, %v967_v36 }
 0x415   : > { %v924_v23 = vpop.permute.xlu0 %923 }
 0x416   : > { %v953_v31 = vrot.slane %v924_v23, %v1523_v32 }
 0x418   : > { %v969_v40 = vsel %vm692_vm6, %v953_v31, %v968_v39 }
 0x419   : > { %v927_v24 = vpop.permute.xlu0 %926 }
 0x41a   : > { %v957_v35 = vrot.slane %v927_v24, %v1523_v32 }
 0x41c   : > { %v970_v41 = vsel %vm694_vm7, %v957_v35, %v969_v40 }
 0x41d   : > { %v930_v33 = vpop.permute.xlu0 %929 }
 0x41e   : > { %v961_v37 = vrot.slane %v930_v33, %v1523_v32 }
 0x420   : > { %v971_v43 = vsel %vm696_vm8, %v961_v37, %v970_v41 }
 0x421   : > { %v933_v25 = vpop.permute.xlu0 %932 }
 0x422   : > { %v965_v42 = vrot.slane %v933_v25, %v1523_v32 }
 0x424   : > { %v972_v44 = vsel %vm698_vm9, %v965_v42, %v971_v43 }
 0x425   : > { %974 = vst.msk [vmem:[%s304_s17] sm:$0xff] %vm701_vm10, %v972_v44 }
 0x426   : > { %1275 = shalt.err (!%p1272_p5)
}
 0x427   : > { %s1276_s10 = scalar_lea.hbm %s1641_s21, 128  ;;  %s1280_s16 = scalar_lea.hbm %s1697_s7, 256 }
 0x428   : > { %p1277_p6 = scmp.ne.s32.totalorder %s1641_s21, %s1276_s10  ;;  %p1281_p10 = scmp.lt.u32.totalorder %s1641_s21, %s1697_s7 }
 0x429   : > { %p1282_p11 = scmp.lt.u32.totalorder %s1280_s16, %s1276_s10  ;;  %p1284_p13 = scmp.lt.u32.totalorder %s1276_s10, %s1641_s21 }
 0x42a   : > { %p1278_p7 = pnand %p1277_p6, %p1428_p4 }
 0x42b   : > { %p1283_p12 = por %p1282_p11, %p1281_p10 }
 0x42c   : > { %p1279_p9 = pneg %p1278_p7 }
 0x42d   : > { %p1285_p0 = por %p1284_p13, %p1283_p12 }
 0x42f   : > { %p1286_p1 = pnand %p1285_p0, %p1279_p9 }
 0x431   : > { %1289 = shalt.err (!%p1286_p1)
}
 0x432   : > { %1152 = dma.vmem_to_hbm [thread:$0]  (%p1428_p4), %s1643_s18, 128, %s1641_s21, %s976_s27  }
 0x433 PF: > { %p1158_p2 = scmp.ge.s32.totalorder %s1340_s29, 2  ;;  %s1002_s20 = sand.u32 1, %s1320_s24  }
 0x434   : > { %s1003_s22 = scalar_lea.sflag [#allocation4], %s1002_s20 }
 0x435   : > { %p1155_p3 = pnand %p1158_p2, %p1435_p8 }
 0x437   : > { %1315 = dma.done.wait (!%p1155_p3), %s1003_s22, 128  }
 0x438   : > { %1317 = vsyncadd (!%p1155_p3), %s1003_s22, 4294967168  ;;  %s20_s29 = sadd.s32 1, %s1340_s29   ;;  %s1700_s24 = smov %s1324_s25 }
 0x439   : > { %p17_p5 = scmp.ge.s32.totalorder %s20_s29, 4   ;;  %s1701_s25 = smov %s1328_s26 }
 0x43a   : > { %s1702_s26 = smov %s1441_s14  ;;  %s1703_s27 = smov %s1336_s28 }
 0x43b   : > { %s1704_s28 = smov %s1706_s9  ;;  %19 = sbr.rel (!%p17_p5) target bundleno = 4 (0x4), region = 90 }
 0x442   :  { %1008 = vsyncpa [#allocation4], 1 }
 0x443   :  { %1010 = vsyncpa [#allocation4 + $0x1], 1 }

</bundles_post_ra>
